<compile_context>
chip_gen: v6e
topology: v6e:2x2x1
jax: 0.10.0
libtpu: 0.0.40
codegen_flags: <defaults>
</compile_context>

<pallas_src>
import functools

import jax
import jax.numpy as jnp
from jax.experimental import pallas as pl
from jax.experimental.pallas import tpu as pltpu


def _get_boxes_kernel(*refs, out_format, norm_mode, num_images):
    """Fused box-format conversion + normalization on a flat lane-dense tile.

    The tile is the row-major flattened [num_boxes, 4] array viewed as
    [rows, 128]: lane l of a row holds coordinate (l & 3) of box (l >> 2) of
    that row (32 boxes per row), so rolls of +-2 lanes pair x1<->x2 / y1<->y2
    without crossing box boundaries.
    """
    if norm_mode is None:
        boxes_ref, out_ref = refs
        ids_ref = tab_ref = None
    elif norm_mode == 'global':
        boxes_ref, tab_ref, out_ref = refs
        ids_ref = None
    else:  # 'per_image'
        boxes_ref, ids_ref, tab_ref, out_ref = refs

    b = boxes_ref[...].astype(jnp.float32)               # [rows, 128]
    rows, lanes = b.shape
    lane = jax.lax.broadcasted_iota(jnp.int32, (rows, lanes), 1)
    is_lo = (lane & 3) < 2                                # x1 / y1 lanes
    is_x = (lane & 1) == 0                                # x coords (scale by 1/W), else 1/H

    if out_format == 'cxcywh':
        nxt = pltpu.roll(b, shift=lanes - 2, axis=1)      # b[l + 2]: (x2, y2) at (x1, y1) lanes
        prv = pltpu.roll(b, shift=2, axis=1)              # b[l - 2]: (x1, y1) at (x2, y2) lanes
        out = jnp.where(is_lo, (b + nxt) * 0.5, b - prv)
    elif out_format == 'xywh':
        prv = pltpu.roll(b, shift=2, axis=1)
        out = jnp.where(is_lo, b, b - prv)
    else:                                                 # None / 'xyxy': pass-through
        out = b

    if norm_mode == 'global':
        # tab_ref: SMEM (2,) = [1/W_pad, 1/H_pad]
        out = out * jnp.where(is_x, tab_ref[0], tab_ref[1])
    elif norm_mode == 'per_image':
        # ids_ref: per-element batch id (int8/int32); tab_ref: SMEM (2B,) = [1/W0, 1/H0, 1/W1, ...]
        ids = ids_ref[...].astype(jnp.int32)

        def body(img, scale):
            val = jnp.where(is_x, tab_ref[2 * img], tab_ref[2 * img + 1])
            return jnp.where(ids == img, val, scale)

        scale = jax.lax.fori_loop(0, num_images, body, jnp.ones_like(out))
        out = out * scale

    out_ref[...] = out.astype(out_ref.dtype)


def _choose_block_rows(rows_total, max_block_rows=2048):
    """rows_total is a multiple of 32; returns a multiple of 32.

    Caps the tile at ~1 MiB/stream (double-buffered: a few MiB of VMEM, safe on
    v7x's 64 MiB / 32 MiB-scoped VMEM) and keeps >= 2 grid steps when there is
    enough work so v7x's two TensorCores can split the box axis.
    """
    block = min(max_block_rows, rows_total)
    if rows_total >= 64:
        half = 32 * pl.cdiv(rows_total // 2, 32)
        block = min(block, half)
    return max(block, 32)


def get_boxes_tensor(boxes, batch_ids=None, img_sizes=None, *,
                     clone=False, detach=False, format=None, normalize=None,
                     in_format='xyxy', padded_img_size=None,
                     max_block_rows=2048):
    """Pallas implementation of GetBoxesTensor.forward.

    Args:
      boxes:      [num_boxes, 4] boxes in 'xyxy' (any float dtype; DMA'd as-is).
      batch_ids:  [num_boxes] int batch index per box (for 'without_padding').
      img_sizes:  [batch_size, 2] (W, H) per image.
      clone/detach: no-ops under JAX (functional arrays); kept for API parity.
      format:     None | 'xyxy' | 'xywh' | 'cxcywh'.
      normalize:  None | 'with_padding' | 'without_padding'.
      padded_img_size: optional explicit (W, H) of the padded Images tensor.

    Returns:
      [num_boxes, 4] float32 boxes tensor.
    """
    del clone, detach  # no-ops with immutable JAX arrays

    if in_format != 'xyxy':
        # TODO(synk): Boxes structures may arrive in other formats; only 'xyxy' input is handled here.
        raise NotImplementedError(f"in_format='{in_format}' not supported (expected 'xyxy').")
    if format not in (None, 'xyxy', 'xywh', 'cxcywh'):
        raise ValueError(f'Unsupported box format in GetBoxesTensor (got {format}).')

    n = boxes.shape[0]
    if n == 0:
        return jnp.zeros((0, 4), jnp.float32)

    out_format = None if format in (None, in_format) else format

    # ---- normalization setup (tiny scalar-side work only) ----
    norm_mode = None          # None | 'global' | 'per_image'
    smem_tab = None
    num_images = 0
    if normalize is not None:
        if normalize == 'false':
            # TODO(synk): Boxes.to_img_scale depends on a runtime 'normalized' flag of the Boxes structure.
            raise NotImplementedError("normalize='false' (to_img_scale) is not implemented.")
        elif normalize == 'with_padding':
            if padded_img_size is not None:
                pad_wh = jnp.asarray(padded_img_size, jnp.float32).reshape(2)
            else:
                if img_sizes is None:
                    raise ValueError("img_sizes (or padded_img_size) required for normalize='with_padding'.")
                # TODO(synk): true padded Images size may include extra size-divisibility padding.
                pad_wh = jnp.max(jnp.asarray(img_sizes, jnp.float32), axis=0)
            smem_tab = 1.0 / pad_wh                                           # (2,): [1/W, 1/H]
            norm_mode = 'global'
        elif normalize == 'without_padding':
            if batch_ids is None or img_sizes is None:
                raise ValueError("batch_ids and img_sizes are required for normalize='without_padding'.")
            num_images = int(img_sizes.shape[0])
            smem_tab = (1.0 / jnp.asarray(img_sizes, jnp.float32)).reshape(-1)  # (2B,): [1/W0,1/H0,...]
            norm_mode = 'per_image'
        else:
            raise ValueError(f'Invalid normalization string in GetBoxesTensor (got {normalize}).')

    # Identity fast path: no device kernel at all.
    if out_format is None and norm_mode is None:
        return boxes.astype(jnp.float32)

    # ---- lane-dense flat view: [rows, 128], 32 boxes per row (free reshape) ----
    align = 1024                               # boxes; keeps rows a multiple of 32 (int8-friendly tiles)
    n_pad = align * pl.cdiv(n, align)
    rows_total = (n_pad * 4) // 128
    if n_pad != n:
        boxes_p = jnp.concatenate([boxes, jnp.zeros((n_pad - n, 4), boxes.dtype)], axis=0)
    else:
        boxes_p = boxes
    boxes_flat = boxes_p.reshape(rows_total, 128)        # keeps incoming dtype (e.g. bf16)

    block_rows = _choose_block_rows(rows_total, max_block_rows)
    grid = (pl.cdiv(rows_total, block_rows),)
    tile_spec = pl.BlockSpec((block_rows, 128), lambda i: (i, 0))

    args = [boxes_flat]
    in_specs = [tile_spec]

    if norm_mode == 'per_image':
        id_dtype = jnp.int8 if num_images <= 127 else jnp.int32
        bid = jnp.asarray(batch_ids).astype(id_dtype)
        if n_pad != n:
            bid = jnp.concatenate([bid, jnp.zeros((n_pad - n,), id_dtype)], axis=0)
        ids_flat = jnp.broadcast_to(bid[:, None], (n_pad, 4)).reshape(rows_total, 128)
        args.append(ids_flat)
        in_specs.append(pl.BlockSpec((block_rows, 128), lambda i: (i, 0)))

    if norm_mode is not None:
        args.append(smem_tab)
        in_specs.append(pl.BlockSpec(memory_space=pltpu.MemorySpace.SMEM))

    out_flat = pl.pallas_call(
        functools.partial(_get_boxes_kernel, out_format=out_format,
                          norm_mode=norm_mode, num_images=num_images),
        out_shape=jax.ShapeDtypeStruct((rows_total, 128), jnp.float32),
        grid=grid,
        in_specs=in_specs,
        out_specs=tile_spec,
        compiler_params=pltpu.CompilerParams(
            dimension_semantics=("parallel",)),
    )(*args)

    out = out_flat.reshape(n_pad, 4)                      # free reshape
    return out if n_pad == n else out[:n]


if __name__ == "__main__":
    key = jax.random.PRNGKey(0)
    kb, ki = jax.random.split(key)

    num_boxes, batch_size = 50, 2                         # not a multiple of 32: exercises padding path
    img_sizes = jnp.array([[64.0, 48.0], [80.0, 32.0]], dtype=jnp.float32)   # (W, H) per image
    batch_ids = jax.random.randint(ki, (num_boxes,), 0, batch_size)

    # Random well-formed xyxy boxes.
    pts = jax.random.uniform(kb, (num_boxes, 4), minval=0.0, maxval=32.0)
    x1 = jnp.minimum(pts[:, 0], pts[:, 2]); x2 = jnp.maximum(pts[:, 0], pts[:, 2])
    y1 = jnp.minimum(pts[:, 1], pts[:, 3]); y2 = jnp.maximum(pts[:, 1], pts[:, 3])
    boxes = jnp.stack([x1, y1, x2, y2], axis=1).astype(jnp.float32)

    def ref_convert(bx, fmt):
        if fmt == 'cxcywh':
            return jnp.stack([(bx[:, 0] + bx[:, 2]) * 0.5, (bx[:, 1] + bx[:, 3]) * 0.5,
                              bx[:, 2] - bx[:, 0], bx[:, 3] - bx[:, 1]], axis=1)
        if fmt == 'xywh':
            return jnp.stack([bx[:, 0], bx[:, 1],
                              bx[:, 2] - bx[:, 0], bx[:, 3] - bx[:, 1]], axis=1)
        return bx

    whwh = img_sizes[batch_ids][:, jnp.array([0, 1, 0, 1])]
    pad_whwh = jnp.max(img_sizes, axis=0)[jnp.array([0, 1, 0, 1])]

    # 1) cxcywh + per-image normalization.
    out = jax.block_until_ready(get_boxes_tensor(
        boxes, batch_ids, img_sizes, clone=True, detach=True,
        format='cxcywh', normalize='without_padding'))
    ref = ref_convert(boxes, 'cxcywh') / whwh
    assert out.shape == (num_boxes, 4) and out.dtype == jnp.float32
    assert jnp.allclose(out, ref, atol=1e-5, rtol=1e-5), "cxcywh/without_padding mismatch"

    # 2) xywh + padded-size normalization.
    out = jax.block_until_ready(get_boxes_tensor(
        boxes, batch_ids, img_sizes, format='xywh', normalize='with_padding'))
    ref = ref_convert(boxes, 'xywh') / pad_whwh
    assert jnp.allclose(out, ref, atol=1e-5, rtol=1e-5), "xywh/with_padding mismatch"

    # 3) format conversion only, bf16 input (DMA'd as bf16, computed in f32).
    boxes_bf16 = boxes.astype(jnp.bfloat16)
    out = jax.block_until_ready(get_boxes_tensor(boxes_bf16, format='cxcywh'))
    ref = ref_convert(boxes_bf16.astype(jnp.float32), 'cxcywh')
    assert out.dtype == jnp.float32
    assert jnp.allclose(out, ref, atol=1e-5, rtol=1e-5), "bf16 cxcywh mismatch"

    # 4) identity config: host fast path, no kernel launched.
    out = jax.block_until_ready(get_boxes_tensor(boxes))
    assert jnp.allclose(out, boxes), "identity mismatch"

    print("KERNEL_OK")
</pallas_src>

<mosaic_0001>
module attributes {stable_mosaic.version = 11 : i64} {
  func.func @_get_boxes_kernel(%arg0: i32, %arg1: memref<32x128xf32, #tpu.memory_space<vmem>>, %arg2: memref<32x128xi8, #tpu.memory_space<vmem>>, %arg3: memref<4xf32, #tpu.memory_space<smem>>, %arg4: memref<32x128xf32, #tpu.memory_space<vmem>>) attributes {dimension_semantics = [#tpu.dimension_semantics<parallel>], iteration_bounds = array<i64: 1>, scalar_prefetch = 0 : i64, scratch_operands = 0 : i64, tpu.core_type = #tpu.core_type<tc>, window_params = [{transform_indices = @transform_0, window_bounds = array<i64: 32, 128>}, {transform_indices = @transform_1, window_bounds = array<i64: 32, 128>}, {transform_indices = @transform_2, window_bounds = array<i64: 4>}, {transform_indices = @transform_3, window_bounds = array<i64: 32, 128>}]} {
    %c0 = arith.constant 0 : index
    %c0_0 = arith.constant 0 : index
    %0 = vector.load %arg1[%c0, %c0_0] : memref<32x128xf32, #tpu.memory_space<vmem>>, vector<32x128xf32>
    %1 = tpu.iota {dimensions = array<i32: 1>} : vector<32x128xi32>
    %c3_i32 = arith.constant 3 : i32
    %2 = vector.broadcast %c3_i32 : i32 to vector<32x128xi32>
    %3 = arith.andi %1, %2 : vector<32x128xi32>
    %c2_i32 = arith.constant 2 : i32
    %4 = vector.broadcast %c2_i32 : i32 to vector<32x128xi32>
    %5 = arith.cmpi slt, %3, %4 : vector<32x128xi32>
    %c1_i32 = arith.constant 1 : i32
    %6 = vector.broadcast %c1_i32 : i32 to vector<32x128xi32>
    %7 = arith.andi %1, %6 : vector<32x128xi32>
    %c0_i32 = arith.constant 0 : i32
    %8 = vector.broadcast %c0_i32 : i32 to vector<32x128xi32>
    %9 = arith.cmpi eq, %7, %8 : vector<32x128xi32>
    %c126_i32 = arith.constant 126 : i32
    %10 = tpu.dynamic_rotate %0 by %c126_i32 dim 1 : vector<32x128xf32>, i32 -> vector<32x128xf32>
    %c2_i32_1 = arith.constant 2 : i32
    %11 = tpu.dynamic_rotate %0 by %c2_i32_1 dim 1 : vector<32x128xf32>, i32 -> vector<32x128xf32>
    %12 = arith.addf %0, %10 : vector<32x128xf32>
    %cst = arith.constant 5.000000e-01 : f32
    %13 = vector.broadcast %cst : f32 to vector<32x128xf32>
    %14 = arith.mulf %12, %13 : vector<32x128xf32>
    %15 = arith.subf %0, %11 : vector<32x128xf32>
    %16 = arith.select %5, %14, %15 : vector<32x128xi1>, vector<32x128xf32>
    %c0_2 = arith.constant 0 : index
    %c0_3 = arith.constant 0 : index
    %17 = vector.load %arg2[%c0_2, %c0_3] : memref<32x128xi8, #tpu.memory_space<vmem>>, vector<32x128xi8>
    %18 = arith.extsi %17 : vector<32x128xi8> to vector<32x128xi32>
    %cst_4 = arith.constant 1.000000e+00 : f32
    %19 = vector.broadcast %cst_4 : f32 to vector<32x128xf32>
    %c0_i32_5 = arith.constant 0 : i32
    %c2_i32_6 = arith.constant 2 : i32
    %20 = arith.addi %c0_i32_5, %c2_i32_6 : i32
    %c1_i32_7 = arith.constant 1 : i32
    %21 = scf.for %arg5 = %c0_i32_5 to %20 step %c1_i32_7 iter_args(%arg6 = %19) -> (vector<32x128xf32>)  : i32 {
      %c2_i32_11 = arith.constant 2 : i32
      %24 = arith.muli %c2_i32_11, %arg5 : i32
      %25 = arith.index_cast %24 : i32 to index
      %26 = memref.load %arg3[%25] : memref<4xf32, #tpu.memory_space<smem>>
      %c2_i32_12 = arith.constant 2 : i32
      %27 = arith.muli %c2_i32_12, %arg5 : i32
      %c1_i32_13 = arith.constant 1 : i32
      %28 = arith.addi %27, %c1_i32_13 : i32
      %29 = arith.index_cast %28 : i32 to index
      %30 = memref.load %arg3[%29] : memref<4xf32, #tpu.memory_space<smem>>
      %31 = vector.broadcast %26 : f32 to vector<32x128xf32>
      %32 = vector.broadcast %30 : f32 to vector<32x128xf32>
      %33 = arith.select %9, %31, %32 : vector<32x128xi1>, vector<32x128xf32>
      %34 = vector.broadcast %arg5 : i32 to vector<32x128xi32>
      %35 = arith.cmpi eq, %18, %34 : vector<32x128xi32>
      %36 = arith.select %35, %33, %arg6 : vector<32x128xi1>, vector<32x128xf32>
      scf.yield %36 : vector<32x128xf32>
    }
    %c2_i32_8 = arith.constant 2 : i32
    %22 = arith.mulf %16, %21 : vector<32x128xf32>
    %c0_9 = arith.constant 0 : index
    %c0_10 = arith.constant 0 : index
    %23 = vector.load %arg4[%c0_9, %c0_10] : memref<32x128xf32, #tpu.memory_space<vmem>>, vector<32x128xf32>
    tpu.vector_store %arg4[%c0_9, %c0_10], %22 {strides = array<i32>} : memref<32x128xf32, #tpu.memory_space<vmem>>, vector<32x128xf32>,
    return
  }
  func.func @transform_0(%arg0: i32) -> (i32, i32) {
    %c0_i32 = arith.constant 0 : i32
    %c0_i32_0 = arith.constant 0 : i32
    return %arg0, %c0_i32 : i32, i32
  }
  func.func @transform_1(%arg0: i32) -> (i32, i32) {
    %c0_i32 = arith.constant 0 : i32
    %c0_i32_0 = arith.constant 0 : i32
    return %arg0, %c0_i32 : i32, i32
  }
  func.func @transform_2(%arg0: i32) -> i32 {
    %c0_i32 = arith.constant 0 : i32
    %c0_i32_0 = arith.constant 0 : i32
    return %c0_i32 : i32
  }
  func.func @transform_3(%arg0: i32) -> (i32, i32) {
    %c0_i32 = arith.constant 0 : i32
    %c0_i32_0 = arith.constant 0 : i32
    return %arg0, %c0_i32 : i32, i32
  }
}

</mosaic_0001>

<bundles_post_ra>
// kernel: tpu_custom_call.1
= control target key start
LH: loop header
LB: loop body
LE: loop exit
PB: predicated region body
PF: predicated region fallthrough
CT: control target
= control target key end

     0   :  { %8 = vsyncpa [#allocation3], 0  ;;  %s423_s0 = inlined_call_operand.hbm [shape: f32[32,128], index: 0, kind: input, shape index: {}]   ;;  %s424_s1 = inlined_call_operand.hbm [shape: s8[32,128], index: 1, kind: input, shape index: {}]   ;;  %s425_s2 = inlined_call_operand.vmem [shape: f32[4], index: 2, kind: input, shape index: {}]   ;;  %s426_s3 = inlined_call_operand.hbm [shape: f32[32,128], index: 3, kind: output, shape index: {}]  }
   0x1   :  { %9 = vsyncpa [#allocation7], 0 }
   0x2   :  { %10 = vsyncpa [#allocation5], 0 }
   0x3   :  { %11 = vsyncpa [#allocation4], 0  ;;  %s340_s12 = smov [#allocation2]  }
   0x4   :  { %s17_s13 = sshll.u32 %s340_s12, 4  ;;  %s18_s13 = int_to_ptr.vmem [resolvable:$true] %s17_s13 }
   0x5   :  { %s228_s14 = scalar_lea.vmem %s18_s13, 512  ;;  %p233_p1 = scmp.lt.s32.totalorder %s18_s13, %s18_s13 }
   0x6   :  { %p229_p0 = scmp.ne.s32.totalorder %s18_s13, %s228_s14  ;;  %p234_p2 = scmp.lt.s32.totalorder %s228_s14, %s228_s14 }
   0x8   :  { %p235_p3 = por %p234_p2, %p233_p1 }
   0xa   :  { %p236_p4 = pnand %p235_p3, %p229_p0 }
   0xc   :  { %239 = shalt.err (!%p236_p4)
}
   0xd   :  { %s341_s15 = smov 128   ;;  %s342_s16 = smov 8  }
   0xe   :  { %23 = dma.hbm_to_vmem [thread:$0]  %s423_s0, 512, %s18_s13, [#allocation3], %s341_s15, %s341_s15, %s342_s16  }
   0xf   :  { %s343_s19 = smov [#allocation6]   ;;  %s40_s23 = sshll.u32 %s425_s2, 4  ;;  %s41_s23 = int_to_ptr.vmem [resolvable:$true] %s40_s23 }
  0x10   :  { %s30_s20 = sshll.u32 %s343_s19, 4  ;;  %s31_s20 = int_to_ptr.vmem [resolvable:$true] %s30_s20 }
  0x11   :  { %s248_s24 = scalar_lea.vmem %s31_s20, 128  ;;  %p253_p6 = scmp.lt.s32.totalorder %s31_s20, %s31_s20 }
  0x12   :  { %p249_p5 = scmp.ne.s32.totalorder %s31_s20, %s248_s24  ;;  %p254_p7 = scmp.lt.s32.totalorder %s248_s24, %s248_s24 }
  0x14   :  { %p255_p8 = por %p254_p7, %p253_p6 }
  0x16   :  { %p256_p9 = pnand %p255_p8, %p249_p5 }
  0x18   :  { %259 = shalt.err (!%p256_p9)
}
  0x19   :  { %33 = dma.hbm_to_vmem [thread:$0]  %s424_s1, 128, %s31_s20, [#allocation7]  }
  0x1a   :  { %s260_s0 = scalar_lea.vmem %s41_s23, 16  ;;  %p265_p11 = scmp.lt.s32.totalorder %s41_s23, %s41_s23 }
  0x1b   :  { %p261_p10 = scmp.ne.s32.totalorder %s41_s23, %s260_s0  ;;  %p266_p12 = scmp.lt.s32.totalorder %s260_s0, %s260_s0 }
  0x1d   :  { %p267_p13 = por %p266_p12, %p265_p11 }
  0x1f   :  { %p268_p0 = pnand %p267_p13, %p261_p10 }
  0x21   :  { %271 = shalt.err (!%p268_p0)
}
  0x22   :  { %s344_s2 = smov [#allocation8]  }
  0x23   :  { %43 = dma.vmem_to_smem %s41_s23, 16, %s344_s2, [#allocation5]  }
  0x24   :  { %312 = dma.done.wait [#allocation3], 512  }
  0x25   :  { %313 = vsyncadd [#allocation3], 4294966784 }
  0x26   :  { %314 = dma.done.wait [#allocation7], 128  }
  0x27   :  { %315 = vsyncadd [#allocation7], 4294967168 }
  0x28   :  { %316 = dma.done.wait [#allocation5], 16  }
  0x29   :  { %317 = vsyncadd [#allocation5], 4294967280 }
  0x2a   :  { %53 = sfence }
  0x2b   :  { %v56_v0 = vld [vmem:[#allocation2 + $0x10] sm:$0xff]  ;;  %v54_v1 = vld [vmem:[#allocation2] sm:$0xff]  ;;  %v58_v2 = vlaneseq  ;;  %s345_s1 = smov 126   ;;  %v57_v4 = vld [vmem:[#allocation2 + $0x18] sm:$0xff]  ;;  %s346_s27 = smov 2   ;;  %v320_v39 = vmov 1.0  }
  0x2c   :  { %68 = vrot.lane.b32.xlu1 %v56_v0, %s345_s1  ;;  %64 = vrot.lane.b32.xlu0 %v54_v1, %s345_s1  ;;  %v380_v3 = vld [vmem:[#allocation6] sm:$0xff]  ;;  %v55_v5 = vld [vmem:[#allocation2 + $0x8] sm:$0xff]  ;;  %v324_v40 = vmov 1.0   ;;  %v328_v41 = vmov 1.0   ;;  %v332_v42 = vmov 1.0   ;;  %s402_s28 = smov 0  }
  0x2d   :  { %v59_v6 = vand.u32 127, %v58_v2  ;;  %v97_v7 = vunpack.c.0.s8 %v380_v3  ;;  %v98_v8 = vunpack.c.1.s8 %v380_v3  ;;  %v99_v9 = vunpack.c.2.s8 %v380_v3 }
  0x2e   :  { %v100_v10 = vunpack.c.3.s8 %v380_v3 }
  0x2f   :  { %v62_v11 = vand.u32 1, %v59_v6  ;;  %v60_v18 = vand.u32 3, %v59_v6 }
  0x30   :  { %70 = vrot.lane.b32.xlu1 %v57_v4, %s345_s1  ;;  %66 = vrot.lane.b32.xlu0 %v55_v5, %s345_s1 }
  0x31   :  { %vm386_vm0 = vcmp.eq.s32.totalorder %v62_v11, 0  ;;  %vm390_vm1 = vcmp.lt.s32.totalorder %v60_v18, 2 }
  0x34   :  { %74 = vrot.lane.b32.xlu1 %v55_v5, %s346_s27  ;;  %72 = vrot.lane.b32.xlu0 %v54_v1, %s346_s27 }
  0x38   :  { %78 = vrot.lane.b32.xlu1 %v57_v4, %s346_s27  ;;  %76 = vrot.lane.b32.xlu0 %v56_v0, %s346_s27 }
  0x9e   :  { %v69_v13 = vpop.permute.xlu1 %68  ;;  %v65_v14 = vpop.permute.xlu0 %64 }
  0x9f   :  { %v80_v15 = vadd.f32 %v65_v14, %v54_v1  ;;  %v82_v20 = vadd.f32 %v69_v13, %v56_v0 }
  0xa1   :  { %v84_v21 = vmul.f32 0.5, %v80_v15  ;;  %v86_v33 = vmul.f32 0.5, %v82_v20 }
  0xa2   :  { %v71_v16 = vpop.permute.xlu1 %70  ;;  %v67_v17 = vpop.permute.xlu0 %66 }
  0xa3   :  { %v81_v19 = vadd.f32 %v67_v17, %v55_v5  ;;  %v83_v25 = vadd.f32 %v71_v16, %v57_v4 }
  0xa5   :  { %v85_v26 = vmul.f32 0.5, %v81_v19  ;;  %v87_v34 = vmul.f32 0.5, %v83_v25 }
  0xa6   :  { %v75_v23 = vpop.permute.xlu1 %74  ;;  %v73_v24 = vpop.permute.xlu0 %72 }
  0xa7   :  { %v89_v27 = vsub.f32 %v55_v5, %v75_v23  ;;  %v88_v28 = vsub.f32 %v54_v1, %v73_v24 }
  0xa9   :  { %v93_v29 = vsel %vm390_vm1, %v85_v26, %v89_v27  ;;  %v92_v30 = vsel %vm390_vm1, %v84_v21, %v88_v28 }
  0xaa   :  { %v79_v31 = vpop.permute.xlu1 %78  ;;  %v77_v32 = vpop.permute.xlu0 %76 }
  0xab   :  { %v91_v35 = vsub.f32 %v57_v4, %v79_v31  ;;  %v90_v36 = vsub.f32 %v56_v0, %v77_v32 }
  0xad   :  { %v95_v37 = vsel %vm390_vm1, %v87_v34, %v91_v35  ;;  %v94_v38 = vsel %vm390_vm1, %v86_v33, %v90_v36 }
  0xae LB: > { %s171_s29 = sshll.u32 %s338_s28, 1  ;;  %v118_v43 = vstv %s338_s28  ;;  %s106_s28 = sadd.s32 1, %s338_s28   ;;  %s338_s28 = sphi %s402_s28, %s106_s28   ;;  %v334_v42 = vphi %v332_v42, %v333_v42   ;;  %v330_v41 = vphi %v328_v41, %v329_v41   ;;  %v326_v40 = vphi %v324_v40, %v325_v40   ;;  %v322_v39 = vphi %v320_v39, %v321_v39  }
  0xaf   : > { %s112_s30 = sld [smem:[#allocation8 + %s171_s29]]  ;;  %s113_s4 = sadd.s32 1, %s171_s29  ;;  %vm119_vm2 = vcmp.eq.s32.totalorder %v97_v7, %v118_v43  ;;  %vm120_vm3 = vcmp.eq.s32.totalorder %v98_v8, %v118_v43  ;;  %vm121_vm4 = vcmp.eq.s32.totalorder %v99_v9, %v118_v43  ;;  %vm122_vm5 = vcmp.eq.s32.totalorder %v100_v10, %v118_v43 }
  0xb0   : > { %s114_s5 = sld [smem:[#allocation8 + %s113_s4]]  ;;  %p103_p1 = scmp.ge.s32.totalorder %s106_s28, 2  }
  0xb1   :  { %s347_s6 = smov (%p103_p1), [#allocation9]  }
  0xb2   :  { %s140_s7 = sshll.u32 (%p103_p1), %s347_s6, 4  ;;  %s141_s7 = int_to_ptr.vmem [resolvable:$true] %s140_s7 }
  0xb3   :  { %s272_s8 = scalar_lea.vmem (%p103_p1), %s141_s7, 512  ;;  %p277_p3 = scmp.lt.s32.totalorder (%p103_p1), %s141_s7, %s141_s7 }
  0xb4   :  { %p273_p2 = scmp.ne.s32.totalorder (%p103_p1), %s141_s7, %s272_s8  ;;  %p278_p4 = scmp.lt.s32.totalorder (%p103_p1), %s272_s8, %s272_s8 }
  0xb5   : > { %v115_v44 = vstv %s112_s30  ;;  %105 = sbr.rel (!%p103_p1) target bundleno = 174 (0xae), region = 51 }
  0xb6   : > { %v116_v45 = vstv %s114_s5  ;;  %p279_p5 = por (%p103_p1), %p278_p4, %p277_p3 }
  0xb7   : > { %v117_v46 = vsel %vm386_vm0, %v115_v44, %v116_v45 }
  0xb8   : > { %v123_v47 = vsel %vm119_vm2, %v117_v46, %v334_v42   ;;  %v124_v48 = vsel %vm120_vm3, %v117_v46, %v330_v41   ;;  %v125_v49 = vsel %vm121_vm4, %v117_v46, %v326_v40   ;;  %v126_v50 = vsel %vm122_vm5, %v117_v46, %v322_v39   ;;  %p280_p6 = pnand (%p103_p1), %p279_p5, %p273_p2 }
  0xb9   : > { %v321_v39 = vmov %v126_v50   ;;  %v325_v40 = vmov %v125_v49   ;;  %v329_v41 = vmov %v124_v48   ;;  %v333_v42 = vmov %v123_v47  }
  0xba   :  { %v127_v51 = vmul.f32 %v123_v47, %v92_v30  ;;  %v128_v52 = vmul.f32 %v124_v48, %v93_v29  ;;  %v129_v53 = vmul.f32 %v125_v49, %v94_v38  ;;  %v130_v54 = vmul.f32 %v126_v50, %v95_v37 }
  0xbc   :  { %131 = vst [vmem:[#allocation9] sm:$0xff] %v127_v51  ;;  %132 = vst [vmem:[#allocation9 + $0x8] sm:$0xff] %v128_v52 }
  0xbd   :  { %133 = vst [vmem:[#allocation9 + $0x10] sm:$0xff] %v129_v53  ;;  %134 = vst [vmem:[#allocation9 + $0x18] sm:$0xff] %v130_v54 }
  0xbe   :  { %283 = shalt.err (!%p280_p6)
}
  0xbf   :  { %146 = dma.vmem_to_hbm [thread:$0]  %s141_s7, 512, %s426_s3, [#allocation4], %s341_s15, %s341_s15, %s342_s16  }
  0xc0   :  { %318 = dma.done.wait [#allocation4], 512  }
  0xc1   :  { %319 = vsyncadd [#allocation4], 4294966784 }
  0xc2   :  { %150 = vsyncpa [#allocation3], 1 }
  0xc3   :  { %151 = vsyncpa [#allocation7], 1 }
  0xc4   :  { %152 = vsyncpa [#allocation4], 1 }
  0xc5   :  { %153 = vsyncpa [#allocation5], 1 }

</bundles_post_ra>
